<compile_context>
chip_gen: v7x
topology: tpu7x:2x2x1
jax: 0.10.0
libtpu: 0.0.40
codegen_flags: <defaults>
</compile_context>

<pallas_src>
import jax
import jax.numpy as jnp
import numpy as np
from jax import lax
from jax.experimental import pallas as pl
from jax.experimental.pallas import tpu as pltpu

EPS = 1e-5


# ---------------------------------------------------------------------------
# In-kernel helper: zero-pad `ot` by 1 px (border-only zeroing) and build the
# (h*w, 9*c) im2col slab for a 3x3 / pad=1 / stride=1 convolution.
# ---------------------------------------------------------------------------
def _im2col_3x3(pad_ref, ot, h, w, c):
    zrow = jnp.zeros((1, w + 2, c), jnp.float32)
    zcol = jnp.zeros((h, 1, c), jnp.float32)
    pad_ref[0:1, :, :] = zrow
    pad_ref[h + 1:h + 2, :, :] = zrow
    pad_ref[1:h + 1, 0:1, :] = zcol
    pad_ref[1:h + 1, w + 1:w + 2, :] = zcol
    pad_ref[1:h + 1, 1:w + 1, :] = ot

    cols = []
    for tap in range(9):
        dy, dx = divmod(tap, 3)
        cols.append(pad_ref[dy:dy + h, dx:dx + w, :].reshape(h * w, c))
    return jnp.concatenate(cols, axis=-1)          # (h*w, 9*c), tap-major cols


# ---------------------------------------------------------------------------
# Kernels
# ---------------------------------------------------------------------------
def _block_proj_kernel(x2_ref, wall_ref, ball_ref, sall_ref, bsum_ref,
                       o_ref, pad_ref):
    """MaxPool(2,2) -> [conv3x3 | dw3x3∘1x1] as ONE fused matmul -> BN/ReLU."""
    _, h2, wp, cc = x2_ref.shape            # h2 = H (pre-pool), cc = 2*cin
    cin = cc // 2
    hp = h2 // 2
    planes = o_ref.shape[-1]

    # MaxPool2d(2, 2): W-pairs live in the lane dim (wrapper bitcast reshape),
    # H-pairs in the leading dim — both max reductions are cheap in-kernel.
    xt = x2_ref[0]                                          # (H, Wp, 2*cin)
    wmax = jnp.maximum(xt[:, :, :cin], xt[:, :, cin:])      # (H, Wp, cin)
    ot = jnp.max(wmax.reshape(hp, 2, wp, cin), axis=1)      # (Hp, Wp, cin)

    slab = _im2col_3x3(pad_ref, ot, hp, wp, cin)            # (s, 9*cin)

    # Single MXU pass: columns [:planes] = conv1 (bias-free), columns
    # [planes:] = composed depthwise->pointwise shortcut (bias in b_all).
    res = jnp.dot(slab, wall_ref[...],
                  preferred_element_type=jnp.float32) + ball_ref[...]
    acts = jnp.maximum(res, 0.0) * sall_ref[...]            # ReLU then BN scale
    out = jnp.maximum(acts[:, :planes] + acts[:, planes:] + bsum_ref[...], 0.0)
    o_ref[0] = out                                          # (s, planes)


def _block_identity_kernel(x_ref, w1_ref, s1_ref, b1_ref, o_ref, pad_ref):
    """conv3x3 (single im2col matmul) -> ReLU -> BN1, + identity, -> ReLU."""
    _, h, w, c = x_ref.shape
    s = h * w
    xt = x_ref[0]                                           # (h, w, c)

    slab = _im2col_3x3(pad_ref, xt, h, w, c)                # (s, 9*c)
    res = jnp.dot(slab, w1_ref[...], preferred_element_type=jnp.float32)
    main = jnp.maximum(res, 0.0) * s1_ref[...] + b1_ref[...]
    o_ref[0] = jnp.maximum(main + xt.reshape(s, c), 0.0)    # (s, c)


# ---------------------------------------------------------------------------
# Parameters
# ---------------------------------------------------------------------------
def _bn_fold(gamma, beta, mean, var):
    scale = gamma / jnp.sqrt(var + EPS)
    return scale, beta - mean * scale


def init_params(key, in_planes, planes, stride=1):
    ks = jax.random.split(key, 16)
    p = {
        "w1":    0.2 * jax.random.normal(ks[0], (planes, in_planes, 3, 3), jnp.float32),
        "bn1_g": jax.random.uniform(ks[1], (planes,), jnp.float32, 0.5, 1.5),
        "bn1_b": 0.1 * jax.random.normal(ks[2], (planes,), jnp.float32),
        "bn1_m": 0.1 * jax.random.normal(ks[3], (planes,), jnp.float32),
        "bn1_v": jax.random.uniform(ks[4], (planes,), jnp.float32, 0.5, 1.5),
    }
    if stride != 1 or in_planes != planes:
        p.update({
            "wdw":   0.2 * jax.random.normal(ks[5], (in_planes, 1, 3, 3), jnp.float32),
            "bdw":   0.1 * jax.random.normal(ks[6], (in_planes,), jnp.float32),
            "wpw":   0.2 * jax.random.normal(ks[7], (planes, in_planes, 1, 1), jnp.float32),
            "bpw":   0.1 * jax.random.normal(ks[8], (planes,), jnp.float32),
            "bn2_g": jax.random.uniform(ks[9], (planes,), jnp.float32, 0.5, 1.5),
            "bn2_b": 0.1 * jax.random.normal(ks[10], (planes,), jnp.float32),
            "bn2_m": 0.1 * jax.random.normal(ks[11], (planes,), jnp.float32),
            "bn2_v": jax.random.uniform(ks[12], (planes,), jnp.float32, 0.5, 1.5),
        })
    return p


# ---------------------------------------------------------------------------
# Wrapper (NCHW in / NCHW out, like PyTorch)
# ---------------------------------------------------------------------------
def basic_block_forward(x_nchw, params, in_planes, planes, stride=1):
    has_proj = (stride != 1) or (in_planes != planes)
    b, c, h, w = x_nchw.shape
    assert c == in_planes
    x = jnp.transpose(x_nchw, (0, 2, 3, 1)).astype(jnp.float32)      # NHWC (glue)

    s1, b1 = _bn_fold(params["bn1_g"], params["bn1_b"], params["bn1_m"], params["bn1_v"])
    # (O, I, ky, kx) -> (ky, kx, I, O) -> (9*cin, planes); row order matches the
    # im2col slab (tap-major, channel-minor).
    w1_mat = jnp.transpose(params["w1"], (2, 3, 1, 0)).reshape(9 * in_planes, planes)

    cparams = pltpu.CompilerParams(dimension_semantics=("parallel",),
                                   vmem_limit_bytes=32 * 1024 * 1024)

    if not has_proj:
        s = h * w
        cost = pl.CostEstimate(
            flops=int(2 * b * s * 9 * in_planes * planes + 6 * b * s * planes),
            transcendentals=0,
            bytes_accessed=int(4 * (b * h * w * in_planes + w1_mat.size
                                    + 2 * planes + b * s * planes)))
        out_flat = pl.pallas_call(
            _block_identity_kernel,
            out_shape=jax.ShapeDtypeStruct((b, s, planes), jnp.float32),
            grid=(b,),
            in_specs=[
                pl.BlockSpec((1, h, w, in_planes), lambda i: (i, 0, 0, 0)),
                pl.BlockSpec((9 * in_planes, planes), lambda i: (0, 0)),
                pl.BlockSpec((1, planes), lambda i: (0, 0)),
                pl.BlockSpec((1, planes), lambda i: (0, 0)),
            ],
            out_specs=pl.BlockSpec((1, s, planes), lambda i: (i, 0, 0)),
            scratch_shapes=[pltpu.VMEM((h + 2, w + 2, in_planes), jnp.float32)],
            compiler_params=cparams,
            cost_estimate=cost,
        )(x, w1_mat, s1[None, :], b1[None, :])
        out_nhwc = out_flat.reshape(b, h, w, planes)
    else:
        assert h % 2 == 0 and w % 2 == 0, "MaxPool2d(2,2) path requires even H, W"
        hp, wp = h // 2, w // 2
        s = hp * wp
        # Free contiguous reshape: W pairs move into the lane dim (no extra
        # HBM traffic, replaces the four strided views of the previous rev).
        x2 = x.reshape(b, h, wp, 2 * in_planes)

        s2, b2 = _bn_fold(params["bn2_g"], params["bn2_b"], params["bn2_m"], params["bn2_v"])
        # Depthwise 3x3 followed (with no nonlinearity in between) by the 1x1
        # conv is a single linear map: fold it into one (9*cin, planes) matrix.
        wdw9 = jnp.transpose(params["wdw"][:, 0], (1, 2, 0)).reshape(9, in_planes)
        wdw_mat = (wdw9[:, :, None] *
                   jnp.eye(in_planes, dtype=jnp.float32)[None]
                   ).reshape(9 * in_planes, in_planes)
        wpw_mat = params["wpw"][:, :, 0, 0].T                        # (cin, planes)
        w_sc = jnp.dot(wdw_mat, wpw_mat, precision=lax.Precision.HIGHEST)
        b_sc = jnp.dot(params["bdw"], wpw_mat,
                       precision=lax.Precision.HIGHEST) + params["bpw"]

        # Fused weight: columns [0:planes] = conv1, [planes:] = shortcut.
        w_all = jnp.concatenate([w1_mat, w_sc], axis=1)              # (9*cin, 2P)
        b_all = jnp.concatenate([jnp.zeros((planes,), jnp.float32), b_sc])
        s_all = jnp.concatenate([s1, s2])
        b_sum = b1 + b2

        cvec2 = pl.BlockSpec((1, 2 * planes), lambda i: (0, 0))
        cost = pl.CostEstimate(
            flops=int(2 * b * s * 9 * in_planes * 2 * planes + 10 * b * s * planes),
            transcendentals=0,
            bytes_accessed=int(4 * (b * h * w * in_planes + w_all.size
                                    + 5 * planes + b * s * planes)))
        out_flat = pl.pallas_call(
            _block_proj_kernel,
            out_shape=jax.ShapeDtypeStruct((b, s, planes), jnp.float32),
            grid=(b,),
            in_specs=[
                pl.BlockSpec((1, h, wp, 2 * in_planes), lambda i: (i, 0, 0, 0)),
                pl.BlockSpec((9 * in_planes, 2 * planes), lambda i: (0, 0)),
                cvec2, cvec2,
                pl.BlockSpec((1, planes), lambda i: (0, 0)),
            ],
            out_specs=pl.BlockSpec((1, s, planes), lambda i: (i, 0, 0)),
            scratch_shapes=[pltpu.VMEM((hp + 2, wp + 2, in_planes), jnp.float32)],
            compiler_params=cparams,
            cost_estimate=cost,
        )(x2, w_all, b_all[None, :], s_all[None, :], b_sum[None, :])
        out_nhwc = out_flat.reshape(b, hp, wp, planes)

    return jnp.transpose(out_nhwc, (0, 3, 1, 2))                     # back to NCHW


# ---------------------------------------------------------------------------
# Pure-JAX reference (NCHW) for correctness checking
# ---------------------------------------------------------------------------
def basic_block_reference(x, params, in_planes, planes, stride=1):
    has_proj = (stride != 1) or (in_planes != planes)
    prec = lax.Precision.HIGHEST

    def bn(v, g, beta, m, var):
        s = g / jnp.sqrt(var + EPS)
        return v * s[None, :, None, None] + (beta - m * s)[None, :, None, None]

    ot = (lax.reduce_window(x, -jnp.inf, lax.max, (1, 1, 2, 2), (1, 1, 2, 2), "VALID")
          if has_proj else x)

    c1 = lax.conv_general_dilated(ot, params["w1"], (1, 1), "SAME",
                                  dimension_numbers=("NCHW", "OIHW", "NCHW"),
                                  precision=prec)
    out = bn(jnp.maximum(c1, 0.0),
             params["bn1_g"], params["bn1_b"], params["bn1_m"], params["bn1_v"])

    if has_proj:
        dw = lax.conv_general_dilated(ot, params["wdw"], (1, 1), "SAME",
                                      dimension_numbers=("NCHW", "OIHW", "NCHW"),
                                      feature_group_count=in_planes, precision=prec)
        dw = dw + params["bdw"][None, :, None, None]
        pw = lax.conv_general_dilated(dw, params["wpw"], (1, 1), "VALID",
                                      dimension_numbers=("NCHW", "OIHW", "NCHW"),
                                      precision=prec)
        pw = pw + params["bpw"][None, :, None, None]
        sc = bn(jnp.maximum(pw, 0.0),
                params["bn2_g"], params["bn2_b"], params["bn2_m"], params["bn2_v"])
    else:
        sc = ot
    return jnp.maximum(out + sc, 0.0)


if __name__ == "__main__":
    key = jax.random.PRNGKey(0)
    kx, kp1, kp2 = jax.random.split(key, 3)

    B, C, H, W = 2, 4, 16, 16
    x = jax.random.normal(kx, (B, C, H, W), jnp.float32)

    # Config 1: projection shortcut + MaxPool (in_planes != planes).
    planes = 8
    params = init_params(kp1, C, planes, stride=1)
    out = jax.block_until_ready(basic_block_forward(x, params, C, planes, stride=1))
    ref = basic_block_reference(x, params, C, planes, stride=1)
    assert out.shape == (B, planes, H // 2, W // 2)
    np.testing.assert_allclose(np.asarray(out), np.asarray(ref), rtol=2e-3, atol=2e-3)

    # Config 2: identity shortcut (in_planes == planes, stride == 1).
    params_id = init_params(kp2, C, C, stride=1)
    out_id = jax.block_until_ready(basic_block_forward(x, params_id, C, C, stride=1))
    ref_id = basic_block_reference(x, params_id, C, C, stride=1)
    assert out_id.shape == (B, C, H, W)
    np.testing.assert_allclose(np.asarray(out_id), np.asarray(ref_id), rtol=2e-3, atol=2e-3)

    print("KERNEL_OK")
</pallas_src>

<mosaic_0001>
module attributes {stable_mosaic.version = 11 : i64} {
  func.func @_block_proj_kernel(%arg0: i32, %arg1: memref<1x16x8x8xf32, #tpu.memory_space<vmem>>, %arg2: memref<36x16xf32, #tpu.memory_space<vmem>>, %arg3: memref<1x16xf32, #tpu.memory_space<vmem>>, %arg4: memref<1x16xf32, #tpu.memory_space<vmem>>, %arg5: memref<1x8xf32, #tpu.memory_space<vmem>>, %arg6: memref<1x64x8xf32, #tpu.memory_space<vmem>>, %arg7: memref<10x10x4xf32, #tpu.memory_space<vmem>>) attributes {dimension_semantics = [#tpu.dimension_semantics<parallel>], iteration_bounds = array<i64: 2>, scalar_prefetch = 0 : i64, scratch_operands = 1 : i64, tpu.core_type = #tpu.core_type<tc>, window_params = [{transform_indices = @transform_0, window_bounds = array<i64: 1, 16, 8, 8>}, {pipeline_mode = #tpu.pipeline_mode<synchronous>, transform_indices = @transform_1, window_bounds = array<i64: 36, 16>}, {pipeline_mode = #tpu.pipeline_mode<synchronous>, transform_indices = @transform_2, window_bounds = array<i64: 1, 16>}, {pipeline_mode = #tpu.pipeline_mode<synchronous>, transform_indices = @transform_3, window_bounds = array<i64: 1, 16>}, {pipeline_mode = #tpu.pipeline_mode<synchronous>, transform_indices = @transform_4, window_bounds = array<i64: 1, 8>}, {transform_indices = @transform_5, window_bounds = array<i64: 1, 64, 8>}]} {
    %c0 = arith.constant 0 : index
    %c0_0 = arith.constant 0 : index
    %c0_1 = arith.constant 0 : index
    %c0_2 = arith.constant 0 : index
    %0 = vector.load %arg1[%c0, %c0_0, %c0_1, %c0_2] : memref<1x16x8x8xf32, #tpu.memory_space<vmem>>, vector<1x16x8x8xf32>
    %1 = vector.shape_cast %0 : vector<1x16x8x8xf32> to vector<16x8x8xf32>
    %2 = vector.extract_strided_slice %1 {offsets = [0, 0, 0], sizes = [16, 8, 4], strides = [1, 1, 1]} : vector<16x8x8xf32> to vector<16x8x4xf32>
    %3 = vector.extract_strided_slice %1 {offsets = [0, 0, 4], sizes = [16, 8, 4], strides = [1, 1, 1]} : vector<16x8x8xf32> to vector<16x8x4xf32>
    %4 = arith.maximumf %2, %3 : vector<16x8x4xf32>
    %5 = vector.shape_cast %4 : vector<16x8x4xf32> to vector<8x2x8x4xf32>
    %cst = arith.constant dense<0xFF800000> : vector<8x8x4xf32>
    %6 = vector.multi_reduction <maximumf>, %5, %cst [1] : vector<8x2x8x4xf32> to vector<8x8x4xf32>
    %cst_3 = arith.constant 0.000000e+00 : f32
    %7 = vector.broadcast %cst_3 : f32 to vector<1x10x4xf32>
    %cst_4 = arith.constant 0.000000e+00 : f32
    %8 = vector.broadcast %cst_4 : f32 to vector<8x1x4xf32>
    %c0_5 = arith.constant 0 : index
    %c0_6 = arith.constant 0 : index
    %c0_7 = arith.constant 0 : index
    %9 = vector.load %arg7[%c0_5, %c0_6, %c0_7] : memref<10x10x4xf32, #tpu.memory_space<vmem>>, vector<1x10x4xf32>
    tpu.vector_store %arg7[%c0_5, %c0_6, %c0_7], %7 {strides = array<i32>} : memref<10x10x4xf32, #tpu.memory_space<vmem>>, vector<1x10x4xf32>,
    %c9 = arith.constant 9 : index
    %c0_8 = arith.constant 0 : index
    %c0_9 = arith.constant 0 : index
    %10 = vector.load %arg7[%c9, %c0_8, %c0_9] : memref<10x10x4xf32, #tpu.memory_space<vmem>>, vector<1x10x4xf32>
    tpu.vector_store %arg7[%c9, %c0_8, %c0_9], %7 {strides = array<i32>} : memref<10x10x4xf32, #tpu.memory_space<vmem>>, vector<1x10x4xf32>,
    %c1 = arith.constant 1 : index
    %c0_10 = arith.constant 0 : index
    %c0_11 = arith.constant 0 : index
    %11 = vector.load %arg7[%c1, %c0_10, %c0_11] : memref<10x10x4xf32, #tpu.memory_space<vmem>>, vector<8x1x4xf32>
    tpu.vector_store %arg7[%c1, %c0_10, %c0_11], %8 {strides = array<i32>} : memref<10x10x4xf32, #tpu.memory_space<vmem>>, vector<8x1x4xf32>,
    %c1_12 = arith.constant 1 : index
    %c9_13 = arith.constant 9 : index
    %c0_14 = arith.constant 0 : index
    %12 = vector.load %arg7[%c1_12, %c9_13, %c0_14] : memref<10x10x4xf32, #tpu.memory_space<vmem>>, vector<8x1x4xf32>
    tpu.vector_store %arg7[%c1_12, %c9_13, %c0_14], %8 {strides = array<i32>} : memref<10x10x4xf32, #tpu.memory_space<vmem>>, vector<8x1x4xf32>,
    %c1_15 = arith.constant 1 : index
    %c1_16 = arith.constant 1 : index
    %c0_17 = arith.constant 0 : index
    %13 = vector.load %arg7[%c1_15, %c1_16, %c0_17] : memref<10x10x4xf32, #tpu.memory_space<vmem>>, vector<8x8x4xf32>
    tpu.vector_store %arg7[%c1_15, %c1_16, %c0_17], %6 {strides = array<i32>} : memref<10x10x4xf32, #tpu.memory_space<vmem>>, vector<8x8x4xf32>,
    %c0_18 = arith.constant 0 : index
    %c0_19 = arith.constant 0 : index
    %c0_20 = arith.constant 0 : index
    %14 = vector.load %arg7[%c0_18, %c0_19, %c0_20] : memref<10x10x4xf32, #tpu.memory_space<vmem>>, vector<8x8x4xf32>
    %15 = vector.shape_cast %14 : vector<8x8x4xf32> to vector<64x4xf32>
    %c0_21 = arith.constant 0 : index
    %c1_22 = arith.constant 1 : index
    %c0_23 = arith.constant 0 : index
    %16 = vector.load %arg7[%c0_21, %c1_22, %c0_23] : memref<10x10x4xf32, #tpu.memory_space<vmem>>, vector<8x8x4xf32>
    %17 = vector.shape_cast %16 : vector<8x8x4xf32> to vector<64x4xf32>
    %c0_24 = arith.constant 0 : index
    %c2 = arith.constant 2 : index
    %c0_25 = arith.constant 0 : index
    %18 = vector.load %arg7[%c0_24, %c2, %c0_25] : memref<10x10x4xf32, #tpu.memory_space<vmem>>, vector<8x8x4xf32>
    %19 = vector.shape_cast %18 : vector<8x8x4xf32> to vector<64x4xf32>
    %c1_26 = arith.constant 1 : index
    %c0_27 = arith.constant 0 : index
    %c0_28 = arith.constant 0 : index
    %20 = vector.load %arg7[%c1_26, %c0_27, %c0_28] : memref<10x10x4xf32, #tpu.memory_space<vmem>>, vector<8x8x4xf32>
    %21 = vector.shape_cast %20 : vector<8x8x4xf32> to vector<64x4xf32>
    %c1_29 = arith.constant 1 : index
    %c1_30 = arith.constant 1 : index
    %c0_31 = arith.constant 0 : index
    %22 = vector.load %arg7[%c1_29, %c1_30, %c0_31] : memref<10x10x4xf32, #tpu.memory_space<vmem>>, vector<8x8x4xf32>
    %23 = vector.shape_cast %22 : vector<8x8x4xf32> to vector<64x4xf32>
    %c1_32 = arith.constant 1 : index
    %c2_33 = arith.constant 2 : index
    %c0_34 = arith.constant 0 : index
    %24 = vector.load %arg7[%c1_32, %c2_33, %c0_34] : memref<10x10x4xf32, #tpu.memory_space<vmem>>, vector<8x8x4xf32>
    %25 = vector.shape_cast %24 : vector<8x8x4xf32> to vector<64x4xf32>
    %c2_35 = arith.constant 2 : index
    %c0_36 = arith.constant 0 : index
    %c0_37 = arith.constant 0 : index
    %26 = vector.load %arg7[%c2_35, %c0_36, %c0_37] : memref<10x10x4xf32, #tpu.memory_space<vmem>>, vector<8x8x4xf32>
    %27 = vector.shape_cast %26 : vector<8x8x4xf32> to vector<64x4xf32>
    %c2_38 = arith.constant 2 : index
    %c1_39 = arith.constant 1 : index
    %c0_40 = arith.constant 0 : index
    %28 = vector.load %arg7[%c2_38, %c1_39, %c0_40] : memref<10x10x4xf32, #tpu.memory_space<vmem>>, vector<8x8x4xf32>
    %29 = vector.shape_cast %28 : vector<8x8x4xf32> to vector<64x4xf32>
    %c2_41 = arith.constant 2 : index
    %c2_42 = arith.constant 2 : index
    %c0_43 = arith.constant 0 : index
    %30 = vector.load %arg7[%c2_41, %c2_42, %c0_43] : memref<10x10x4xf32, #tpu.memory_space<vmem>>, vector<8x8x4xf32>
    %31 = vector.shape_cast %30 : vector<8x8x4xf32> to vector<64x4xf32>
    %32 = tpu.concatenate %15, %17, %19, %21, %23, %25, %27, %29, %31 in 1 : vector<64x4xf32>, vector<64x4xf32>, vector<64x4xf32>, vector<64x4xf32>, vector<64x4xf32>, vector<64x4xf32>, vector<64x4xf32>, vector<64x4xf32>, vector<64x4xf32> -> vector<64x36xf32>
    %c0_44 = arith.constant 0 : index
    %c0_45 = arith.constant 0 : index
    %33 = vector.load %arg2[%c0_44, %c0_45] : memref<36x16xf32, #tpu.memory_space<vmem>>, vector<36x16xf32>
    %cst_46 = arith.constant dense<0.000000e+00> : vector<64x16xf32>
    %34 = tpu.matmul %32, %33, %cst_46 {dimension_numbers = #tpu.dot_dimension_numbers<[1], [0], [0], [1], [0, 0, 1, 1], [], []>} : vector<64x36xf32>, vector<36x16xf32>, vector<64x16xf32> -> vector<64x16xf32>
    %c0_47 = arith.constant 0 : index
    %c0_48 = arith.constant 0 : index
    %35 = vector.load %arg3[%c0_47, %c0_48] : memref<1x16xf32, #tpu.memory_space<vmem>>, vector<1x16xf32>
    %36 = vector.broadcast %35 : vector<1x16xf32> to vector<64x16xf32>
    %37 = arith.addf %34, %36 : vector<64x16xf32>
    %cst_49 = arith.constant 0.000000e+00 : f32
    %38 = vector.broadcast %cst_49 : f32 to vector<64x16xf32>
    %39 = arith.maximumf %37, %38 : vector<64x16xf32>
    %c0_50 = arith.constant 0 : index
    %c0_51 = arith.constant 0 : index
    %40 = vector.load %arg4[%c0_50, %c0_51] : memref<1x16xf32, #tpu.memory_space<vmem>>, vector<1x16xf32>
    %41 = vector.broadcast %40 : vector<1x16xf32> to vector<64x16xf32>
    %42 = arith.mulf %39, %41 : vector<64x16xf32>
    %43 = vector.extract_strided_slice %42 {offsets = [0, 0], sizes = [64, 8], strides = [1, 1]} : vector<64x16xf32> to vector<64x8xf32>
    %44 = vector.extract_strided_slice %42 {offsets = [0, 8], sizes = [64, 8], strides = [1, 1]} : vector<64x16xf32> to vector<64x8xf32>
    %45 = arith.addf %43, %44 : vector<64x8xf32>
    %c0_52 = arith.constant 0 : index
    %c0_53 = arith.constant 0 : index
    %46 = vector.load %arg5[%c0_52, %c0_53] : memref<1x8xf32, #tpu.memory_space<vmem>>, vector<1x8xf32>
    %47 = vector.broadcast %46 : vector<1x8xf32> to vector<64x8xf32>
    %48 = arith.addf %45, %47 : vector<64x8xf32>
    %cst_54 = arith.constant 0.000000e+00 : f32
    %49 = vector.broadcast %cst_54 : f32 to vector<64x8xf32>
    %50 = arith.maximumf %48, %49 : vector<64x8xf32>
    %c0_55 = arith.constant 0 : index
    %c0_56 = arith.constant 0 : index
    %c0_57 = arith.constant 0 : index
    %51 = vector.load %arg6[%c0_55, %c0_56, %c0_57] : memref<1x64x8xf32, #tpu.memory_space<vmem>>, vector<1x64x8xf32>
    %52 = vector.shape_cast %51 : vector<1x64x8xf32> to vector<64x8xf32>
    %53 = vector.shape_cast %50 : vector<64x8xf32> to vector<1x64x8xf32>
    tpu.vector_store %arg6[%c0_55, %c0_56, %c0_57], %53 {strides = array<i32>} : memref<1x64x8xf32, #tpu.memory_space<vmem>>, vector<1x64x8xf32>,
    return
  }
  func.func @transform_0(%arg0: i32) -> (i32, i32, i32, i32) {
    %c0_i32 = arith.constant 0 : i32
    %c0_i32_0 = arith.constant 0 : i32
    %c0_i32_1 = arith.constant 0 : i32
    %c0_i32_2 = arith.constant 0 : i32
    return %arg0, %c0_i32, %c0_i32_0, %c0_i32_1 : i32, i32, i32, i32
  }
  func.func @transform_1(%arg0: i32) -> (i32, i32) {
    %c0_i32 = arith.constant 0 : i32
    %c0_i32_0 = arith.constant 0 : i32
    %c0_i32_1 = arith.constant 0 : i32
    return %c0_i32, %c0_i32_0 : i32, i32
  }
  func.func @transform_2(%arg0: i32) -> (i32, i32) {
    %c0_i32 = arith.constant 0 : i32
    %c0_i32_0 = arith.constant 0 : i32
    %c0_i32_1 = arith.constant 0 : i32
    return %c0_i32, %c0_i32_0 : i32, i32
  }
  func.func @transform_3(%arg0: i32) -> (i32, i32) {
    %c0_i32 = arith.constant 0 : i32
    %c0_i32_0 = arith.constant 0 : i32
    %c0_i32_1 = arith.constant 0 : i32
    return %c0_i32, %c0_i32_0 : i32, i32
  }
  func.func @transform_4(%arg0: i32) -> (i32, i32) {
    %c0_i32 = arith.constant 0 : i32
    %c0_i32_0 = arith.constant 0 : i32
    %c0_i32_1 = arith.constant 0 : i32
    return %c0_i32, %c0_i32_0 : i32, i32
  }
  func.func @transform_5(%arg0: i32) -> (i32, i32, i32) {
    %c0_i32 = arith.constant 0 : i32
    %c0_i32_0 = arith.constant 0 : i32
    %c0_i32_1 = arith.constant 0 : i32
    return %arg0, %c0_i32, %c0_i32_0 : i32, i32, i32
  }
}

</mosaic_0001>

<bundles_post_ra>
// kernel: tpu_custom_call.1
= control target key start
LH: loop header
LB: loop body
LE: loop exit
PB: predicated region body
PF: predicated region fallthrough
CT: control target
= control target key end

     0   :  { %s1215_s18 = smov 0   ;;  %s1608_s0 = inlined_call_operand.vmem [shape: f32[2,16,8,8], index: 0, kind: input, shape index: {}]   ;;  %s1609_s1 = inlined_call_operand.vmem [shape: f32[36,16], index: 1, kind: input, shape index: {}]   ;;  %s1610_s2 = inlined_call_operand.vmem [shape: f32[1,16], index: 2, kind: input, shape index: {}]   ;;  %s1611_s3 = inlined_call_operand.vmem [shape: f32[1,16], index: 3, kind: input, shape index: {}]   ;;  %s1612_s4 = inlined_call_operand.vmem [shape: f32[1,8], index: 4, kind: input, shape index: {}]   ;;  %s1613_s5 = inlined_call_operand.vmem [shape: f32[2,64,8], index: 5, kind: output, shape index: {}]  }
   0x1 LB: > { %s1073_s19 = sadd.s32 4294967295, %s1172_s18   ;;  %p1077_p0 = scmp.ge.s32.totalorder %s1172_s18, 1  ;;  %s1172_s18 = sphi %s1215_s18, %s15_s18  }
   0x2   : > { %p187_p1 = scmp.lt.s32.totalorder %s1172_s18, 3 }
   0x4   : > { %p188_p2 = pnand %p1077_p0, %p187_p1 }
   0x5   : > { %p215_p3 = scmp.lt.s32.totalorder (!%p188_p2), %s1073_s19, 1  ;;  %vm321_vm0 = vcmask (!%p188_p2), 31744   ;;  %vm347_vm1 = vcmask (!%p188_p2), 25600   ;;  %v1174_v0 = vmov (!%p188_p2), 0.0   ;;  %vm353_vm2 = vcmask (!%p188_p2), 24576   ;;  %s1175_s24 = smov (!%p188_p2), 124  }
   0x6   : > { %191 = sbr.rel (%p188_p2) target bundleno = 730 (0x2da), region = 40  ;;  %346 = vst.msk [vmem:[#allocation2] sm:$0xff] (!%p188_p2), %vm321_vm0, %v1174_v0  ;;  %350 = vst.msk [vmem:[#allocation2 + $0x90] sm:$0xff] (!%p188_p2), %vm321_vm0, %v1174_v0  ;;  %s1176_s25 = smov (!%p188_p2), 4   ;;  %vm815_vm3 = vcmask (!%p188_p2), 1043456   ;;  %vm715_vm4 = vcmask (!%p188_p2), 64512  }
   0x7   : > { %348 = vst.msk [vmem:[#allocation2 + $0x8] sm:$0x3] (!%p188_p2), %vm347_vm1, %v1174_v0  ;;  %351 = vst.msk [vmem:[#allocation2 + $0x98] sm:$0x3] (!%p188_p2), %vm347_vm1, %v1174_v0  ;;  %s1177_s26 = smov (!%p188_p2), 8   ;;  %s1178_s27 = smov (!%p188_p2), 12  }
   0x8   : > { %362 = vst.msk [vmem:[#allocation2 + $0x19] sm:$0x1] (!%p188_p2), %vm353_vm2, %v1174_v0  ;;  %354 = vst.msk [vmem:[#allocation2 + $0x10] sm:$0x1] (!%p188_p2), %vm353_vm2, %v1174_v0  ;;  %s1179_s28 = smov (!%p188_p2), 16   ;;  %s1180_s29 = smov (!%p188_p2), 20  }
   0x9   : > { %355 = vst.msk [vmem:[#allocation2 + $0x20] sm:$0x1] (!%p188_p2), %vm353_vm2, %v1174_v0  ;;  %356 = vst.msk [vmem:[#allocation2 + $0x30] sm:$0x1] (!%p188_p2), %vm353_vm2, %v1174_v0  ;;  %s1181_s30 = smov (!%p188_p2), 24   ;;  %s1182_s6 = smov (!%p188_p2), 28  }
   0xa   : > { %357 = vst.msk [vmem:[#allocation2 + $0x40] sm:$0x1] (!%p188_p2), %vm353_vm2, %v1174_v0  ;;  %358 = vst.msk [vmem:[#allocation2 + $0x50] sm:$0x1] (!%p188_p2), %vm353_vm2, %v1174_v0  ;;  %s1183_s17 = smov (!%p188_p2), 32   ;;  %vm724_vm5 = vcmask (!%p188_p2), 97280  }
   0xb   : > { %359 = vst.msk [vmem:[#allocation2 + $0x60] sm:$0x1] (!%p188_p2), %vm353_vm2, %v1174_v0  ;;  %360 = vst.msk [vmem:[#allocation2 + $0x70] sm:$0x1] (!%p188_p2), %vm353_vm2, %v1174_v0  ;;  %vm733_vm6 = vcmask (!%p188_p2), 130048   ;;  %vm742_vm7 = vcmask (!%p188_p2), 162816  }
   0xc   : > { %361 = vst.msk [vmem:[#allocation2 + $0x80] sm:$0x1] (!%p188_p2), %vm353_vm2, %v1174_v0  ;;  %363 = vst.msk [vmem:[#allocation2 + $0x29] sm:$0x1] (!%p188_p2), %vm353_vm2, %v1174_v0  ;;  %vm751_vm8 = vcmask (!%p188_p2), 195584   ;;  %vm760_vm9 = vcmask (!%p188_p2), 228352  }
   0xd   : > { %s1615_s19 = smov (!%p215_p3, %s1073_s19), 1  ;;  %364 = vst.msk [vmem:[#allocation2 + $0x39] sm:$0x1] %vm353_vm2, %v1174_v0  ;;  %365 = vst.msk [vmem:[#allocation2 + $0x49] sm:$0x1] %vm353_vm2, %v1174_v0  ;;  %vm769_vm10 = vcmask 261120  }
   0xe   : > { %366 = vst.msk [vmem:[#allocation2 + $0x59] sm:$0x1] %vm353_vm2, %v1174_v0  ;;  %367 = vst.msk [vmem:[#allocation2 + $0x69] sm:$0x1] %vm353_vm2, %v1174_v0  ;;  %s1096_s20 = sshll.u32 %s1615_s19, 7  ;;  %v386_v17 = vld [vmem:[#allocation2 + $0x1] sm:$0xff] }
   0xf   : > { %368 = vst.msk [vmem:[#allocation2 + $0x79] sm:$0x1] %vm353_vm2, %v1174_v0  ;;  %369 = vst.msk [vmem:[#allocation2 + $0x89] sm:$0x1] %vm353_vm2, %v1174_v0  ;;  %s1247_s23 = scalar_lea.vmem %s1608_s0, %s1096_s20  ;;  %v394_v18 = vld [vmem:[#allocation2 + $0x2] sm:$0xff]  ;;  %vm790_vm11 = vcmask 293888  }
  0x10   : > { %v231_v1 = vld [vmem:[%s1247_s23 + $0x30] sm:$0xff]  ;;  %v225_v2 = vld [vmem:[%s1247_s23] sm:$0xff]  ;;  %v232_v3 = vld [vmem:[%s1247_s23 + $0x38] sm:$0xff] }
  0x11   : > { %269 = vrot.lane.b32.xlu0 %v231_v1, %s1175_s24  ;;  %257 = vrot.lane.b32.xlu1 %v225_v2, %s1175_s24  ;;  %v226_v4 = vld [vmem:[%s1247_s23 + $0x8] sm:$0xff]  ;;  %v233_v5 = vld [vmem:[%s1247_s23 + $0x40] sm:$0xff] }
  0x12   : > { %v234_v6 = vld [vmem:[%s1247_s23 + $0x48] sm:$0xff]  ;;  %v227_v7 = vld [vmem:[%s1247_s23 + $0x10] sm:$0xff]  ;;  %v228_v8 = vld [vmem:[%s1247_s23 + $0x18] sm:$0xff] }
  0x13   : > { %v1258_v9 = vld [vmem:[%s1247_s23 + $0x50] sm:$0xff]  ;;  %v1261_v10 = vld [vmem:[%s1247_s23 + $0x58] sm:$0xff]  ;;  %v1266_v11 = vld [vmem:[%s1247_s23 + $0x20] sm:$0xff] }
  0x14   : > { %v1269_v12 = vld [vmem:[%s1247_s23 + $0x28] sm:$0xff]  ;;  %v1274_v13 = vld [vmem:[%s1247_s23 + $0x60] sm:$0xff]  ;;  %v1282_v15 = vld [vmem:[%s1247_s23 + $0x70] sm:$0xff] }
  0x15   : > { %271 = vrot.lane.b32.xlu0 %v232_v3, %s1175_s24  ;;  %259 = vrot.lane.b32.xlu1 %v226_v4, %s1175_s24  ;;  %v1277_v14 = vld [vmem:[%s1247_s23 + $0x68] sm:$0xff]  ;;  %v1285_v16 = vld [vmem:[%s1247_s23 + $0x78] sm:$0xff] }
  0x19   : > { %273 = vrot.lane.b32.xlu0 %v233_v5, %s1175_s24  ;;  %275 = vrot.lane.b32.xlu1 %v234_v6, %s1175_s24 }
  0x1d   : > { %261 = vrot.lane.b32.xlu0 %v227_v7, %s1175_s24  ;;  %263 = vrot.lane.b32.xlu1 %v228_v8, %s1175_s24 }
  0x21   : > { %277 = vrot.lane.b32.xlu0 %v1258_v9, %s1175_s24  ;;  %279 = vrot.lane.b32.xlu1 %v1261_v10, %s1175_s24 }
  0x25   : > { %265 = vrot.lane.b32.xlu0 %v1266_v11, %s1175_s24  ;;  %267 = vrot.lane.b32.xlu1 %v1269_v12, %s1175_s24 }
  0x29   : > { %281 = vrot.lane.b32.xlu0 %v1274_v13, %s1175_s24  ;;  %283 = vrot.lane.b32.xlu1 %v1277_v14, %s1175_s24 }
  0x2d   : > { %285 = vrot.lane.b32.xlu0 %v1282_v15, %s1175_s24  ;;  %287 = vrot.lane.b32.xlu1 %v1285_v16, %s1175_s24  ;;  %s1184_s24 = smov 120  }
  0x31   : > { %459 = vrot.lane.b32.xlu0 %v386_v17, %s1176_s25 }
  0x35   : > { %491 = vrot.lane.b32.xlu0 %v394_v18, %s1177_s26 }
  0x83   : > { %v270_v19 = vpop.permute.xlu0 %269  ;;  %v258_v20 = vpop.permute.xlu1 %257 }
  0x84   : > { %v311_v21 = vmax.f32 %v231_v1, %v270_v19  ;;  %v305_v22 = vmax.f32 %v225_v2, %v258_v20 }
  0x86   : > { %v331_v27 = vsel %vm321_vm0, %v311_v21, -inf  ;;  %v322_v28 = vsel %vm321_vm0, %v305_v22, -inf }
  0x87   : > { %v272_v23 = vpop.permute.xlu0 %271  ;;  %v260_v24 = vpop.permute.xlu1 %259 }
  0x88   : > { %v312_v25 = vmax.f32 %v232_v3, %v272_v23  ;;  %v306_v26 = vmax.f32 %v226_v4, %v260_v24 }
  0x8a   : > { %v332_v29 = vsel %vm321_vm0, %v312_v25, -inf  ;;  %v323_v30 = vsel %vm321_vm0, %v306_v26, -inf }
  0x8b   : > { %v333_v31 = vmax.f32 %v331_v27, %v332_v29  ;;  %v324_v32 = vmax.f32 %v322_v28, %v323_v30  ;;  %v274_v33 = vpop.permute.xlu0 %273  ;;  %v276_v34 = vpop.permute.xlu1 %275 }
  0x8c   : > { %v313_v35 = vmax.f32 %v233_v5, %v274_v33  ;;  %v314_v36 = vmax.f32 %v234_v6, %v276_v34  ;;  %v779_v33 = vld [vmem:[%s1609_s1 + $0x8] sm:$0xff] }
  0x8d   : > { %373 = vst.msk [vmem:[#allocation2 + $0x41] sm:$0xff] %vm321_vm0, %v333_v31  ;;  %370 = vst.msk [vmem:[#allocation2 + $0x11] sm:$0xff] %vm321_vm0, %v324_v32  ;;  %v778_v32 = vld [vmem:[%s1609_s1] sm:$0xff] }
  0x8e   : > { %v334_v37 = vsel %vm321_vm0, %v313_v35, -inf  ;;  %v335_v38 = vsel %vm321_vm0, %v314_v36, -inf  ;;  %v1133_v34 = vpack.c.bf16 %v779_v33, %v778_v32  ;;  %v780_v35 = vld [vmem:[%s1609_s1 + $0x10] sm:$0xff]  ;;  %v781_v36 = vld [vmem:[%s1609_s1 + $0x18] sm:$0xff] }
  0x8f   : > { %v336_v39 = vmax.f32 %v334_v37, %v335_v38  ;;  %v262_v40 = vpop.permute.xlu0 %261  ;;  %v264_v41 = vpop.permute.xlu1 %263  ;;  %v1137_v37 = vpack.c.bf16 %v781_v36, %v780_v35 }
  0x90   : > { %v307_v42 = vmax.f32 %v227_v7, %v262_v40  ;;  %v308_v43 = vmax.f32 %v228_v8, %v264_v41  ;;  %1134 = vmatprep.subr.bf16.mxu0 %v1133_v34  ;;  %1141 = vmatprep.subr.bf16.mxu1 %v1133_v34 }
  0x91   : > { %374 = vst.msk [vmem:[#allocation2 + $0x51] sm:$0xff] %vm321_vm0, %v336_v39  ;;  %1136 = vmatpush3.bf16.msra.mxu0 %v1133_v34  ;;  %1144 = vmatpush3.bf16.msra.mxu1 %v1133_v34  ;;  %v782_v39 = vld [vmem:[%s1609_s1 + $0x20] sm:$0xf] }
  0x92   : > { %v325_v44 = vsel %vm321_vm0, %v307_v42, -inf  ;;  %v326_v45 = vsel %vm321_vm0, %v308_v43, -inf  ;;  %1138 = vmatprep.subr.bf16.mxu0 %v1137_v37  ;;  %1142 = vmatprep.subr.bf16.mxu1 %v1137_v37  ;;  %v434_v43 = vld [vmem:[#allocation2 + $0x90] sm:$0xff] }
  0x93   : > { %v327_v46 = vmax.f32 %v325_v44, %v326_v45  ;;  %v278_v47 = vpop.permute.xlu0 %277  ;;  %v280_v48 = vpop.permute.xlu1 %279  ;;  %v442_v45 = vld [vmem:[#allocation2 + $0x91] sm:$0xff] }
  0x94   : > { %v1302_v49 = vld [vmem:[#allocation2 + $0x41] sm:$0xff]  ;;  %v387_v50 = vld [vmem:[#allocation2 + $0x11] sm:$0xff]  ;;  %v315_v51 = vmax.f32 %v1258_v9, %v278_v47  ;;  %v316_v52 = vmax.f32 %v1261_v10, %v280_v48 }
  0x95   : > { %371 = vst.msk [vmem:[#allocation2 + $0x21] sm:$0xff] %vm321_vm0, %v327_v46  ;;  %467 = vrot.lane.b32.xlu1 %v1302_v49, %s1176_s25  ;;  %461 = vrot.lane.b32.xlu0 %v387_v50, %s1176_s25  ;;  %v395_v58 = vld [vmem:[#allocation2 + $0x12] sm:$0xff]  ;;  %v1324_v4 = vld [vmem:[#allocation2 + $0x42] sm:$0xff] }
  0x96   : > { %v337_v53 = vsel %vm321_vm0, %v315_v51, -inf  ;;  %v338_v54 = vsel %vm321_vm0, %v316_v52, -inf  ;;  %v1322_v3 = vld [vmem:[#allocation2 + $0x10] sm:$0xff]  ;;  %v405_v31 = vld [vmem:[#allocation2 + $0x40] sm:$0xff]  ;;  %1140 = vmatpush3.bf16.msra.mxu0 %v1137_v37  ;;  %1145 = vmatpush3.bf16.msra.mxu1 %v1137_v37 }
  0x97   : > { %v339_v55 = vmax.f32 %v337_v53, %v338_v54  ;;  %v266_v56 = vpop.permute.xlu0 %265  ;;  %v268_v57 = vpop.permute.xlu1 %267  ;;  %1119 = vmatprep.subr.msk.mxu0 %vm815_vm3, %v782_v39  ;;  %1143 = vmatprep.subr.msk.mxu1 %vm815_vm3, %v782_v39  ;;  %v450_v53 = vld [vmem:[#allocation2 + $0x92] sm:$0xff] }
  0x98   : > { %v1312_v59 = vld [vmem:[#allocation2 + $0x51] sm:$0xff]  ;;  %v309_v60 = vmax.f32 %v1266_v11, %v266_v56  ;;  %v310_v61 = vmax.f32 %v1269_v12, %v268_v57 }
  0x99   : > { %493 = vrot.lane.b32.xlu0 %v395_v58, %s1177_s26  ;;  %469 = vrot.lane.b32.xlu1 %v1312_v59, %s1176_s25  ;;  %375 = vst.msk [vmem:[#allocation2 + $0x61] sm:$0xff] %vm321_vm0, %v339_v55  ;;  %v1348_v21 = vld [vmem:[#allocation2 + $0x50] sm:$0xff] }
  0x9a   : > { %v328_v62 = vsel %vm321_vm0, %v309_v60, -inf  ;;  %v329_v63 = vsel %vm321_vm0, %v310_v61, -inf  ;;  %1120 = vmatpush3.msk.msra.mxu0 %vm815_vm3, %v782_v39  ;;  %1146 = vmatpush3.msk.msra.mxu1 %vm815_vm3, %v782_v39 }
  0x9b   : > { %v330_v0 = vmax.f32 %v328_v62, %v329_v63  ;;  %v282_v1 = vpop.permute.xlu0 %281  ;;  %v284_v2 = vpop.permute.xlu1 %283 }
  0x9c   : > { %v317_v5 = vmax.f32 %v1274_v13, %v282_v1  ;;  %v318_v6 = vmax.f32 %v1277_v14, %v284_v2  ;;  %v1333_v7 = vld [vmem:[#allocation2 + $0x20] sm:$0xff]  ;;  %v1337_v13 = vld [vmem:[#allocation2 + $0x52] sm:$0xff] }
  0x9d   : > { %523 = vrot.lane.b32.xlu0 %v1322_v3, %s1178_s27  ;;  %499 = vrot.lane.b32.xlu1 %v1324_v4, %s1177_s26  ;;  %372 = vst.msk [vmem:[#allocation2 + $0x31] sm:$0xff] %vm321_vm0, %v330_v0  ;;  %v396_v24 = vld [vmem:[#allocation2 + $0x22] sm:$0xff] }
  0x9e   : > { %v340_v8 = vsel %vm321_vm0, %v317_v5, -inf  ;;  %v341_v9 = vsel %vm321_vm0, %v318_v6, -inf }
  0x9f   : > { %v342_v10 = vmax.f32 %v340_v8, %v341_v9  ;;  %v286_v11 = vpop.permute.xlu0 %285  ;;  %v288_v12 = vpop.permute.xlu1 %287 }
  0xa0   : > { %v319_v14 = vmax.f32 %v1282_v15, %v286_v11  ;;  %v320_v17 = vmax.f32 %v1285_v16, %v288_v12  ;;  %v1354_v15 = vld [vmem:[#allocation2 + $0x60] sm:$0xff] }
  0xa1   : > { %501 = vrot.lane.b32.xlu1 %v1337_v13, %s1177_s26  ;;  %525 = vrot.lane.b32.xlu0 %v1333_v7, %s1178_s27  ;;  %376 = vst.msk [vmem:[#allocation2 + $0x71] sm:$0xff] %vm321_vm0, %v342_v10  ;;  %v388_v16 = vld [vmem:[#allocation2 + $0x21] sm:$0xff] }
  0xa2   : > { %v343_v18 = vsel %vm321_vm0, %v319_v14, -inf  ;;  %v344_v19 = vsel %vm321_vm0, %v320_v17, -inf  ;;  %v392_v22 = vld [vmem:[#allocation2 + $0x61] sm:$0xff] }
  0xa3   : > { %v345_v20 = vmax.f32 %v343_v18, %v344_v19  ;;  %v400_v26 = vld [vmem:[#allocation2 + $0x62] sm:$0xff]  ;;  %v1429_v42 = vpop.permute.xlu0 %459 }
  0xa4   : > { %v389_v23 = vld [vmem:[#allocation2 + $0x31] sm:$0xff] }
  0xa5   : > { %531 = vrot.lane.b32.xlu1 %v1348_v21, %s1178_s27  ;;  %555 = vrot.lane.b32.xlu0 %v387_v50, %s1179_s28  ;;  %377 = vst.msk [vmem:[#allocation2 + $0x81] sm:$0xff] %vm321_vm0, %v345_v20  ;;  %v397_v27 = vld [vmem:[#allocation2 + $0x32] sm:$0xff] }
  0xa6   : > { %v1376_v28 = vld [vmem:[#allocation2 + $0x30] sm:$0xff] }
  0xa7   : > { %v1437_v44 = vpop.permute.xlu0 %491 }
  0xa8   : > { %v393_v25 = vld [vmem:[#allocation2 + $0x71] sm:$0xff] }
  0xa9   : > { %463 = vrot.lane.b32.xlu0 %v388_v16, %s1176_s25  ;;  %533 = vrot.lane.b32.xlu1 %v1354_v15, %s1178_s27  ;;  %v401_v29 = vld [vmem:[#allocation2 + $0x72] sm:$0xff] }
  0xaa   : > { %v1385_v30 = vld [vmem:[#allocation2 + $0x70] sm:$0xff] }
  0xac   : > { %v409_v38 = vld [vmem:[#allocation2 + $0x80] sm:$0xff] }
  0xad   : > { %557 = vrot.lane.b32.xlu0 %v388_v16, %s1179_s28  ;;  %563 = vrot.lane.b32.xlu1 %v1312_v59, %s1179_s28  ;;  %v417_v40 = vld [vmem:[#allocation2 + $0x81] sm:$0xff] }
  0xae   : > { %v425_v41 = vld [vmem:[#allocation2 + $0x82] sm:$0xff] }
  0xb1   : > { %587 = vrot.lane.b32.xlu0 %v395_v58, %s1180_s29  ;;  %471 = vrot.lane.b32.xlu1 %v392_v22, %s1176_s25 }
  0xb5   : > { %565 = vrot.lane.b32.xlu1 %v392_v22, %s1179_s28  ;;  %465 = vrot.lane.b32.xlu0 %v389_v23, %s1176_s25 }
  0xb9   : > { %595 = vrot.lane.b32.xlu1 %v1337_v13, %s1180_s29  ;;  %495 = vrot.lane.b32.xlu0 %v396_v24, %s1177_s26 }
  0xbd   : > { %589 = vrot.lane.b32.xlu0 %v396_v24, %s1180_s29  ;;  %473 = vrot.lane.b32.xlu1 %v393_v25, %s1176_s25 }
  0xc1   : > { %619 = vrot.lane.b32.xlu0 %v1333_v7, %s1181_s30  ;;  %503 = vrot.lane.b32.xlu1 %v400_v26, %s1177_s26 }
  0xc5   : > { %497 = vrot.lane.b32.xlu0 %v397_v27, %s1177_s26  ;;  %597 = vrot.lane.b32.xlu1 %v400_v26, %s1180_s29 }
  0xc9   : > { %527 = vrot.lane.b32.xlu0 %v1376_v28, %s1178_s27  ;;  %627 = vrot.lane.b32.xlu1 %v1354_v15, %s1181_s30 }
  0xcd   : > { %621 = vrot.lane.b32.xlu0 %v1376_v28, %s1181_s30  ;;  %505 = vrot.lane.b32.xlu1 %v401_v29, %s1177_s26 }
  0xd1   : > { %651 = vrot.lane.b32.xlu0 %v388_v16, %s1182_s6  ;;  %535 = vrot.lane.b32.xlu1 %v1385_v30, %s1178_s27 }
  0xd5   : > { %529 = vrot.lane.b32.xlu0 %v405_v31, %s1178_s27  ;;  %629 = vrot.lane.b32.xlu1 %v1385_v30, %s1181_s30 }
  0xd9   : > { %559 = vrot.lane.b32.xlu0 %v389_v23, %s1179_s28  ;;  %659 = vrot.lane.b32.xlu1 %v392_v22, %s1182_s6 }
  0xdd   : > { %653 = vrot.lane.b32.xlu0 %v389_v23, %s1182_s6  ;;  %537 = vrot.lane.b32.xlu1 %v409_v38, %s1178_s27  ;;  %s1097_s27 = sshll.u32 %s1615_s19, 6 }
  0xe1   : > { %683 = vrot.lane.b32.xlu0 %v396_v24, %s1183_s17  ;;  %567 = vrot.lane.b32.xlu1 %v393_v25, %s1179_s28 }
  0xe5   : > { %561 = vrot.lane.b32.xlu0 %v1302_v49, %s1179_s28  ;;  %661 = vrot.lane.b32.xlu1 %v393_v25, %s1182_s6 }
  0xe9   : > { %591 = vrot.lane.b32.xlu0 %v397_v27, %s1180_s29  ;;  %691 = vrot.lane.b32.xlu1 %v400_v26, %s1183_s17 }
  0xed   : > { %685 = vrot.lane.b32.xlu0 %v397_v27, %s1183_s17  ;;  %569 = vrot.lane.b32.xlu1 %v417_v40, %s1179_s28 }
  0xf1   : > { %593 = vrot.lane.b32.xlu0 %v1324_v4, %s1180_s29  ;;  %599 = vrot.lane.b32.xlu1 %v401_v29, %s1180_s29 }
  0xf5   : > { %623 = vrot.lane.b32.xlu0 %v405_v31, %s1181_s30  ;;  %693 = vrot.lane.b32.xlu1 %v401_v29, %s1183_s17 }
  0xf9   : > { %625 = vrot.lane.b32.xlu0 %v1348_v21, %s1181_s30  ;;  %601 = vrot.lane.b32.xlu1 %v425_v41, %s1180_s29 }
  0xfd   : > { %655 = vrot.lane.b32.xlu0 %v1302_v49, %s1182_s6  ;;  %631 = vrot.lane.b32.xlu1 %v409_v38, %s1181_s30 }
 0x101   : > { %657 = vrot.lane.b32.xlu0 %v1312_v59, %s1182_s6  ;;  %633 = vrot.lane.b32.xlu1 %v434_v43, %s1181_s30  ;;  %s1587_s30 = scalar_lea.vmem %s1613_s5, %s1097_s27 }
 0x105   : > { %687 = vrot.lane.b32.xlu0 %v1324_v4, %s1183_s17  ;;  %663 = vrot.lane.b32.xlu1 %v417_v40, %s1182_s6 }
 0x107   : > { %v462_v46 = vpop.permute.xlu0 %461  ;;  %v468_v47 = vpop.permute.xlu1 %467 }
 0x108   : > { %v711_v48 = vsel %vm321_vm0, %v405_v31, %v468_v47  ;;  %v708_v49 = vsel %vm321_vm0, %v1322_v3, %v462_v46  ;;  %v378_v31 = vld [vmem:[#allocation2] sm:$0xff] }
 0x109   : > { %689 = vrot.lane.b32.xlu0 %v1337_v13, %s1183_s17  ;;  %665 = vrot.lane.b32.xlu1 %v442_v45, %s1182_s6  ;;  %v707_v32 = vsel %vm321_vm0, %v378_v31, %v1429_v42 }
 0x10a   : > { %v716_v35 = vsel %vm715_vm4, %v707_v32, %v1437_v44 }
 0x10b   : > { %v494_v50 = vpop.permute.xlu0 %493  ;;  %v470_v51 = vpop.permute.xlu1 %469 }
 0x10c   : > { %v717_v52 = vsel %vm715_vm4, %v708_v49, %v494_v50  ;;  %v712_v57 = vsel %vm321_vm0, %v1348_v21, %v470_v51 }
 0x10d   : > { %695 = vrot.lane.b32.xlu1 %v425_v41, %s1183_s17 }
 0x10f   : > { %v524_v54 = vpop.permute.xlu0 %523  ;;  %v500_v55 = vpop.permute.xlu1 %499 }
 0x110   : > { %v720_v56 = vsel %vm715_vm4, %v711_v48, %v500_v55  ;;  %v725_v36 = vsel %vm724_vm5, %v716_v35, %v524_v54 }
 0x111   : > { %697 = vrot.lane.b32.xlu1 %v450_v53, %s1183_s17 }
 0x113   : > { %v526_v58 = vpop.permute.xlu0 %525  ;;  %v502_v59 = vpop.permute.xlu1 %501 }
 0x114   : > { %v1455_v60 = vsel %vm724_vm5, %v717_v52, %v526_v58  ;;  %v721_v61 = vsel %vm715_vm4, %v712_v57, %v502_v59 }
 0x117   : > { %v556_v62 = vpop.permute.xlu0 %555  ;;  %v532_v63 = vpop.permute.xlu1 %531 }
 0x118   : > { %v734_v39 = vsel %vm733_vm6, %v725_v36, %v556_v62  ;;  %v729_v46 = vsel %vm724_vm5, %v720_v56, %v532_v63 }
 0x11b   : > { %v464_v0 = vpop.permute.xlu0 %463  ;;  %v534_v1 = vpop.permute.xlu1 %533 }
 0x11c   : > { %v1459_v2 = vsel %vm724_vm5, %v721_v61, %v534_v1  ;;  %v709_v10 = vsel %vm321_vm0, %v1333_v7, %v464_v0 }
 0x11f   : > { %v558_v3 = vpop.permute.xlu0 %557  ;;  %v564_v4 = vpop.permute.xlu1 %563 }
 0x120   : > { %v738_v49 = vsel %vm733_vm6, %v729_v46, %v564_v4  ;;  %v735_v55 = vsel %vm733_vm6, %v1455_v60, %v558_v3 }
 0x123   : > { %v588_v5 = vpop.permute.xlu0 %587  ;;  %v472_v6 = vpop.permute.xlu1 %471 }
 0x124   : > { %v713_v18 = vsel %vm321_vm0, %v1354_v15, %v472_v6  ;;  %v743_v40 = vsel %vm742_vm7, %v734_v39, %v588_v5 }
 0x127   : > { %v1461_v8 = vpop.permute.xlu0 %465  ;;  %v1463_v9 = vpop.permute.xlu1 %565 }
 0x128   : > { %v739_v60 = vsel %vm733_vm6, %v1459_v2, %v1463_v9 }
 0x12b   : > { %v496_v11 = vpop.permute.xlu0 %495  ;;  %v596_v12 = vpop.permute.xlu1 %595 }
 0x12c   : > { %v1468_v13 = vsel %vm715_vm4, %v709_v10, %v496_v11  ;;  %v747_v50 = vsel %vm742_vm7, %v738_v49, %v596_v12 }
 0x12f   : > { %v590_v14 = vpop.permute.xlu0 %589  ;;  %v1470_v17 = vpop.permute.xlu1 %473 }
 0x130   : > { %v744_v58 = vsel %vm742_vm7, %v735_v55, %v590_v14 }
 0x133   : > { %v620_v19 = vpop.permute.xlu0 %619  ;;  %v504_v20 = vpop.permute.xlu1 %503 }
 0x134   : > { %v1475_v21 = vsel %vm715_vm4, %v713_v18, %v504_v20  ;;  %v752_v41 = vsel %vm751_vm8, %v743_v40, %v620_v19  ;;  %v714_v40 = vsel %vm321_vm0, %v1385_v30, %v1470_v17 }
 0x137   : > { %v1477_v16 = vpop.permute.xlu0 %497  ;;  %v598_v22 = vpop.permute.xlu1 %597 }
 0x138   : > { %v748_v3 = vsel %vm742_vm7, %v739_v60, %v598_v22 }
 0x13b   : > { %v1479_v7 = vpop.permute.xlu0 %527  ;;  %v628_v23 = vpop.permute.xlu1 %627 }
 0x13c   : > { %v756_v51 = vsel %vm751_vm8, %v747_v50, %v628_v23  ;;  %v727_v2 = vsel %vm724_vm5, %v1468_v13, %v1479_v7  ;;  %v710_v23 = vsel %vm321_vm0, %v1376_v28, %v1461_v8 }
 0x13f   : > { %v622_v24 = vpop.permute.xlu0 %621  ;;  %v1481_v25 = vpop.permute.xlu1 %505 }
 0x140   : > { %v753_v56 = vsel %vm751_vm8, %v744_v58, %v622_v24 }
 0x143   : > { %v652_v26 = vpop.permute.xlu0 %651  ;;  %v1483_v27 = vpop.permute.xlu1 %535 }
 0x144   : > { %v761_v42 = vsel %vm760_vm9, %v752_v41, %v652_v26  ;;  %v719_v26 = vsel %vm715_vm4, %v710_v23, %v1477_v16  ;;  %v731_v16 = vsel %vm724_vm5, %v1475_v21, %v1483_v27 }
 0x147   : > { %v1485_v29 = vpop.permute.xlu0 %529  ;;  %v630_v15 = vpop.permute.xlu1 %629 }
 0x148   : > { %v757_v4 = vsel %vm751_vm8, %v748_v3, %v630_v15  ;;  %v728_v31 = vsel %vm724_vm5, %v719_v26, %v1485_v29  ;;  %v1093_v26 = vld [vmem:[%s1612_s4] ss:$0 sm:$0xff] }
 0x14b   : > { %v560_v33 = vpop.permute.xlu0 %559  ;;  %v660_v34 = vpop.permute.xlu1 %659 }
 0x14c   : > { %v765_v52 = vsel %vm760_vm9, %v756_v51, %v660_v34  ;;  %v736_v22 = vsel %vm733_vm6, %v727_v2, %v560_v33 }
 0x14f   : > { %v654_v37 = vpop.permute.xlu0 %653  ;;  %v1492_v38 = vpop.permute.xlu1 %537 }
 0x150   : > { %v762_v59 = vsel %vm760_vm9, %v753_v56, %v654_v37 }
 0x153   : > { %v684_v43 = vpop.permute.xlu0 %683  ;;  %v568_v44 = vpop.permute.xlu1 %567 }
 0x154   : > { %v770_v45 = vsel %vm769_vm10, %v761_v42, %v684_v43  ;;  %v740_v37 = vsel %vm733_vm6, %v731_v16, %v568_v44  ;;  %v723_v42 = vsel %vm715_vm4, %v714_v40, %v1481_v25 }
 0x155   : > { %1121 = vmatprep.mubr.msk.f32.mxu0 %vm790_vm11, %v770_v45  ;;  %v732_v27 = vsel %vm724_vm5, %v723_v42, %v1492_v38  ;;  %v1082_v38 = vld [vmem:[%s1610_s2] ss:$0 sm:$0xff] }
 0x157   : > { %v562_v47 = vpop.permute.xlu0 %561  ;;  %v662_v48 = vpop.permute.xlu1 %661 }
 0x158   : > { %v766_v5 = vsel %vm760_vm9, %v757_v4, %v662_v48  ;;  %v737_v33 = vsel %vm733_vm6, %v728_v31, %v562_v47 }
 0x15b   : > { %v592_v53 = vpop.permute.xlu0 %591  ;;  %v692_v54 = vpop.permute.xlu1 %691 }
 0x15c   : > { %v774_v57 = vsel %vm769_vm10, %v765_v52, %v692_v54  ;;  %v745_v24 = vsel %vm742_vm7, %v736_v22, %v592_v53  ;;  %v1092_v52 = vld [vmem:[%s1611_s3] ss:$0 sm:$0xff] }
 0x15d   : > { %1127 = vmatprep.mubr.msk.f32.mxu1 %vm790_vm11, %v774_v57 }
 0x15f   : > { %v686_v61 = vpop.permute.xlu0 %685  ;;  %v570_v62 = vpop.permute.xlu1 %569 }
 0x160   : > { %v771_v63 = vsel %vm769_vm10, %v762_v59, %v686_v61  ;;  %v741_v45 = vsel %vm733_vm6, %v732_v27, %v570_v62 }
 0x161   : > { %1122 = vmatmul.mubr.msk.f32.vlgmr.msra.gmra.mrb[0].mxu0 %vm790_vm11, %v771_v63 }
 0x163   : > { %v594_v0 = vpop.permute.xlu0 %593  ;;  %v600_v1 = vpop.permute.xlu1 %599 }
 0x164   : > { %v746_v28 = vsel %vm742_vm7, %v737_v33, %v594_v0  ;;  %v749_v41 = vsel %vm742_vm7, %v740_v37, %v600_v1 }
 0x167   : > { %v624_v6 = vpop.permute.xlu0 %623  ;;  %v694_v10 = vpop.permute.xlu1 %693 }
 0x168   : > { %v775_v11 = vsel %vm769_vm10, %v766_v5, %v694_v10  ;;  %v754_v15 = vsel %vm751_vm8, %v745_v24, %v624_v6 }
 0x169   : > { %1128 = vmatmul.mubr.msk.f32.vlgmr.msra.gmra.mrb[0].mxu1 %vm790_vm11, %v775_v11 }
 0x16b   : > { %v626_v12 = vpop.permute.xlu0 %625  ;;  %v602_v14 = vpop.permute.xlu1 %601 }
 0x16c   : > { %v755_v8 = vsel %vm751_vm8, %v746_v28, %v626_v12  ;;  %v750_v30 = vsel %vm742_vm7, %v741_v45, %v602_v14 }
 0x16f   : > { %v656_v18 = vpop.permute.xlu0 %655  ;;  %v632_v19 = vpop.permute.xlu1 %631 }
 0x170   : > { %v763_v13 = vsel %vm760_vm9, %v754_v15, %v656_v18  ;;  %v758_v21 = vsel %vm751_vm8, %v749_v41, %v632_v19 }
 0x173   : > { %v658_v9 = vpop.permute.xlu0 %657  ;;  %v634_v20 = vpop.permute.xlu1 %633 }
 0x174   : > { %v764_v29 = vsel %vm760_vm9, %v755_v8, %v658_v9  ;;  %v759_v17 = vsel %vm751_vm8, %v750_v30, %v634_v20 }
 0x177   : > { %v688_v7 = vpop.permute.xlu0 %687  ;;  %v664_v32 = vpop.permute.xlu1 %663 }
 0x178   : > { %v772_v34 = vsel %vm769_vm10, %v763_v13, %v688_v7  ;;  %v767_v43 = vsel %vm760_vm9, %v758_v21, %v664_v32 }
 0x179   : > { %1124 = vmatprep.mubr.msk.f32.mxu0 %vm790_vm11, %v772_v34 }
 0x17b   : > { %v690_v35 = vpop.permute.xlu0 %689  ;;  %v666_v36 = vpop.permute.xlu1 %665 }
 0x17c   : > { %v773_v39 = vsel %vm769_vm10, %v764_v29, %v690_v35  ;;  %v768_v25 = vsel %vm760_vm9, %v759_v17, %v666_v36 }
 0x17d   : > { %1125 = vmatmul.mubr.msk.f32.gmra.mrb[2].mxu0 %vm790_vm11, %v773_v39 }
 0x17f   : > { %v696_v44 = vpop.permute.xlu1 %695 }
 0x180   : > { %v776_v46 = vsel %vm769_vm10, %v767_v43, %v696_v44 }
 0x181   : > { %1130 = vmatprep.mubr.msk.f32.mxu1 %vm790_vm11, %v776_v46 }
 0x183   : > { %v698_v47 = vpop.permute.xlu1 %697 }
 0x184   : > { %v777_v48 = vsel %vm769_vm10, %v768_v25, %v698_v47 }
 0x185   : > { %1131 = vmatmul.mubr.msk.f32.gmra.mrb[2].mxu1 %vm790_vm11, %v777_v48 }
 0x234   : > { %v1123_v49 = vpop.f32.mrb[0].mxu0 }
 0x235   : > { %v891_v50 = vadd.f32 %v1123_v49, %v1082_v38  ;;  %v885_v51 = vpop.f32.mrb[1].mxu0 }
 0x236   : > { %v886_v53 = vadd.f32 %v1082_v38, %v885_v51 }
 0x237   : > { %v925_v54 = vmax.f32 %v891_v50, 0.0 }
 0x238   : > { %v924_v55 = vmax.f32 %v886_v53, 0.0 }
 0x239   : > { %v940_v57 = vmul.f32 %v1092_v52, %v925_v54 }
 0x23a   : > { %v939_v58 = vmul.f32 %v1092_v52, %v924_v55 }
 0x23b   : > { %957 = vrot.lane.b32.xlu1 %v940_v57, %s1184_s24 }
 0x23c   : > { %955 = vrot.lane.b32.xlu0 %v939_v58, %s1184_s24  ;;  %v1129_v56 = vpop.f32.mrb[0].mxu1 }
 0x23d   : > { %v911_v59 = vadd.f32 %v1129_v56, %v1082_v38  ;;  %v905_v61 = vpop.f32.mrb[1].mxu1 }
 0x23e   : > { %v906_v62 = vadd.f32 %v1082_v38, %v905_v61 }
 0x23f   : > { %v929_v63 = vmax.f32 %v911_v59, 0.0 }
 0x240   : > { %v928_v0 = vmax.f32 %v906_v62, 0.0 }
 0x241   : > { %v944_v1 = vmul.f32 %v1092_v52, %v929_v63 }
 0x242   : > { %v943_v60 = vmul.f32 %v1092_v52, %v928_v0 }
 0x243   : > { %965 = vrot.lane.b32.xlu1 %v944_v1, %s1184_s24 }
 0x244   : > { %963 = vrot.lane.b32.xlu0 %v943_v60, %s1184_s24 }
 0x250   : > { %v1126_v3 = vpop.f32.mrb[2].mxu0 }
 0x251   : > { %v901_v4 = vadd.f32 %v1126_v3, %v1082_v38  ;;  %v895_v5 = vpop.f32.mrb[3].mxu0 }
 0x252   : > { %v896_v6 = vadd.f32 %v1082_v38, %v895_v5 }
 0x253   : > { %v927_v10 = vmax.f32 %v901_v4, 0.0 }
 0x254   : > { %v926_v11 = vmax.f32 %v896_v6, 0.0 }
 0x255   : > { %v942_v12 = vmul.f32 %v1092_v52, %v927_v10 }
 0x256   : > { %v941_v14 = vmul.f32 %v1092_v52, %v926_v11 }
 0x257   : > { %961 = vrot.lane.b32.xlu1 %v942_v12, %s1184_s24 }
 0x258   : > { %959 = vrot.lane.b32.xlu0 %v941_v14, %s1184_s24  ;;  %v1132_v18 = vpop.f32.mrb[2].mxu1 }
 0x259   : > { %v921_v19 = vadd.f32 %v1132_v18, %v1082_v38  ;;  %v915_v2 = vpop.f32.mrb[3].mxu1 }
 0x25a   : > { %v916_v9 = vadd.f32 %v1082_v38, %v915_v2 }
 0x25b   : > { %v931_v20 = vmax.f32 %v921_v19, 0.0 }
 0x25c   : > { %v930_v22 = vmax.f32 %v916_v9, 0.0 }
 0x25d   : > { %v946_v23 = vmul.f32 %v1092_v52, %v931_v20 }
 0x25e   : > { %v945_v24 = vmul.f32 %v1092_v52, %v930_v22 }
 0x25f   : > { %969 = vrot.lane.b32.xlu1 %v946_v23, %s1184_s24 }
 0x260   : > { %967 = vrot.lane.b32.xlu0 %v945_v24, %s1184_s24 }
 0x2ad   : > { %v958_v15 = vpop.permute.xlu1 %957 }
 0x2ae   : > { %v980_v31 = vadd.f32 %v958_v15, %v940_v57  ;;  %v956_v13 = vpop.permute.xlu0 %955 }
 0x2af   : > { %v979_v7 = vadd.f32 %v956_v13, %v939_v58 }
 0x2b0   : > { %v995_v32 = vadd.f32 %v1093_v26, %v980_v31 }
 0x2b1   : > { %v994_v33 = vadd.f32 %v1093_v26, %v979_v7 }
 0x2b2   : > { %v1003_v34 = vmax.f32 %v995_v32, 0.0 }
 0x2b3   : > { %v1002_v28 = vmax.f32 %v994_v33, 0.0 }
 0x2b4   : > { %1011 = vst.msk [vmem:[%s1587_s30 + $0x8] sm:$0xff] %vm715_vm4, %v1003_v34 }
 0x2b5   : > { %1010 = vst.msk [vmem:[%s1587_s30] sm:$0xff] %vm715_vm4, %v1002_v28  ;;  %v966_v8 = vpop.permute.xlu1 %965 }
 0x2b6   : > { %v984_v16 = vadd.f32 %v966_v8, %v944_v1  ;;  %v964_v29 = vpop.permute.xlu0 %963 }
 0x2b7   : > { %v983_v35 = vadd.f32 %v964_v29, %v943_v60 }
 0x2b8   : > { %v999_v36 = vadd.f32 %v1093_v26, %v984_v16 }
 0x2b9   : > { %v998_v37 = vadd.f32 %v1093_v26, %v983_v35 }
 0x2ba   : > { %v1007_v39 = vmax.f32 %v999_v36, 0.0 }
 0x2bb   : > { %v1006_v40 = vmax.f32 %v998_v37, 0.0 }
 0x2bc   : > { %1015 = vst.msk [vmem:[%s1587_s30 + $0x28] sm:$0xff] %vm715_vm4, %v1007_v39 }
 0x2bd   : > { %1014 = vst.msk [vmem:[%s1587_s30 + $0x20] sm:$0xff] %vm715_vm4, %v1006_v40 }
 0x2c9   : > { %v962_v41 = vpop.permute.xlu1 %961 }
 0x2ca   : > { %v982_v42 = vadd.f32 %v962_v41, %v942_v12  ;;  %v960_v21 = vpop.permute.xlu0 %959 }
 0x2cb   : > { %v981_v27 = vadd.f32 %v960_v21, %v941_v14 }
 0x2cc   : > { %v997_v43 = vadd.f32 %v1093_v26, %v982_v42 }
 0x2cd   : > { %v996_v44 = vadd.f32 %v1093_v26, %v981_v27 }
 0x2ce   : > { %v1005_v45 = vmax.f32 %v997_v43, 0.0 }
 0x2cf   : > { %v1004_v46 = vmax.f32 %v996_v44, 0.0 }
 0x2d0   : > { %1013 = vst.msk [vmem:[%s1587_s30 + $0x18] sm:$0xff] %vm715_vm4, %v1005_v45 }
 0x2d1   : > { %1012 = vst.msk [vmem:[%s1587_s30 + $0x10] sm:$0xff] %vm715_vm4, %v1004_v46  ;;  %v970_v30 = vpop.permute.xlu1 %969 }
 0x2d2   : > { %v986_v17 = vadd.f32 %v970_v30, %v946_v23  ;;  %v968_v25 = vpop.permute.xlu0 %967 }
 0x2d3   : > { %v985_v47 = vadd.f32 %v968_v25, %v945_v24 }
 0x2d4   : > { %v1001_v48 = vadd.f32 %v1093_v26, %v986_v17 }
 0x2d5   : > { %v1000_v38 = vadd.f32 %v1093_v26, %v985_v47 }
 0x2d6   : > { %v1009_v49 = vmax.f32 %v1001_v48, 0.0 }
 0x2d7   : > { %v1008_v50 = vmax.f32 %v1000_v38, 0.0 }
 0x2d8   : > { %1017 = vst.msk [vmem:[%s1587_s30 + $0x38] sm:$0xff] %vm715_vm4, %v1009_v49 }
 0x2d9   : > { %1016 = vst.msk [vmem:[%s1587_s30 + $0x30] sm:$0xff] %vm715_vm4, %v1008_v50 }
 0x2da PF: > { %s15_s18 = sadd.s32 1, %s1172_s18  }
 0x2db   : > { %p12_p4 = scmp.ge.s32.totalorder %s15_s18, 4  }
 0x2dd   :  { %14 = sbr.rel (!%p12_p4) target bundleno = 1 (0x1), region = 73 }

</bundles_post_ra>
